<compile_context>
chip_gen: v7x
topology: tpu7x:2x2x1
jax: 0.10.0
libtpu: 0.0.40
codegen_flags: <defaults>
</compile_context>

<pallas_src>
import functools

import jax
import jax.numpy as jnp
from jax import lax
from jax.experimental import pallas as pl
from jax.experimental.pallas import tpu as pltpu


def _reg_branch_kernel(z_ref, out_ref, *, batch_size, num_features, ncrops,
                       padded_dim):
    """One branch (student OR teacher) per grid step.

    z_ref:   (ncrops, B, Dp) in VMEM, native input dtype.
    out_ref: (8, 128) f32 in VMEM; lane 0 = std hinge mean, lane 1 = raw
             off-diagonal sum of squares of S = zc^T zc (un-normalized).
    """
    # Crop mean -> (B, Dp). ncrops is static; specialize the common case of 2.
    if ncrops == 2:
        z = (z_ref[0].astype(jnp.float32) + z_ref[1].astype(jnp.float32)) * 0.5
    else:
        z = jnp.mean(z_ref[...].astype(jnp.float32), axis=0)

    # Center over the batch axis.
    zc = z - jnp.mean(z, axis=0, keepdims=True)

    # Per-feature sum of squares. This is both (B-1)*var and diag(zc^T zc).
    ssq = jnp.sum(zc * zc, axis=0, keepdims=True)            # (1, Dp)

    # Unbiased std + hinge, masked to the real (un-padded) features.
    var = ssq * (1.0 / jnp.float32(batch_size - 1))
    std = jnp.sqrt(var + 1e-4)
    hinge = jnp.maximum(1.0 - std, 0.0)
    if padded_dim != num_features:
        lane = lax.broadcasted_iota(jnp.int32, hinge.shape, 1)
        hinge = jnp.where(lane < num_features, hinge, 0.0)
    std_part = jnp.sum(hinge) / jnp.float32(num_features)

    # Raw covariance numerator S = zc^T @ zc, contracting the batch axis
    # directly (no materialized transpose).  f32 accumulate on the MXU.
    s = lax.dot_general(
        zc, zc,
        dimension_numbers=(((0,), (0,)), ((), ())),
        preferred_element_type=jnp.float32,
        precision=lax.Precision.HIGHEST)

    # Off-diagonal squared sum of S: sum(S^2) - sum(diag(S)^2), with
    # diag(S) == ssq.  Normalization by (B-1)^2 * num_features happens in the
    # wrapper on the scalar.
    cov_raw = jnp.sum(s * s) - jnp.sum(ssq * ssq)

    lane = lax.broadcasted_iota(jnp.int32, out_ref.shape, 1)
    out_ref[...] = jnp.where(lane == 0, std_part,
                             jnp.where(lane == 1, cov_raw, 0.0))


def reg_loss(tea_reg_out, stu_reg_out, *, out_dim, std_coeff, cov_coeff,
             per_batch_size, global_ncrops=2):
    """JAX/Pallas equivalent of RegLoss.forward (world_size == 1)."""
    emb_dim = tea_reg_out.shape[1]
    assert emb_dim == out_dim
    assert per_batch_size > 1, "unbiased variance needs batch_size > 1"
    assert tea_reg_out.shape[0] == global_ncrops * per_batch_size
    batch_size = per_batch_size  # * world_size(=1)

    # Lane-dense embedding dim (pad with zeros to a multiple of 128).
    padded_dim = max(128, ((out_dim + 127) // 128) * 128)

    def prep(x):
        x3 = x.reshape(global_ncrops, -1, emb_dim)  # keep native dtype
        if padded_dim != emb_dim:
            x3 = jnp.pad(x3, ((0, 0), (0, 0), (0, padded_dim - emb_dim)))
        return x3

    # Stack student (0) and teacher (1) on a leading "parallel" grid axis.
    z = jnp.stack([prep(stu_reg_out), prep(tea_reg_out)], axis=0)
    # z: (2, ncrops, B, Dp)

    kernel = functools.partial(
        _reg_branch_kernel,
        batch_size=int(batch_size),
        num_features=int(out_dim),
        ncrops=int(global_ncrops),
        padded_dim=int(padded_dim),
    )

    # Size the scoped VMEM limit to the actual working set (double-buffered
    # input block + DxD matmul result + a few (B,Dp)/(1,Dp) temporaries).
    itemsize = jnp.dtype(z.dtype).itemsize
    block_bytes = global_ncrops * per_batch_size * padded_dim * itemsize
    est = (4 * block_bytes
           + 3 * padded_dim * padded_dim * 4
           + 8 * per_batch_size * padded_dim * 4
           + (1 << 20))
    vmem_limit = int(min(64 << 20, max(16 << 20, est)))

    parts = pl.pallas_call(
        kernel,
        out_shape=jax.ShapeDtypeStruct((2, 8, 128), jnp.float32),
        grid=(2,),
        in_specs=[
            pl.BlockSpec((None, global_ncrops, per_batch_size, padded_dim),
                         lambda i: (i, 0, 0, 0)),
        ],
        out_specs=pl.BlockSpec((None, 8, 128), lambda i: (i, 0, 0)),
        compiler_params=pltpu.CompilerParams(
            dimension_semantics=("parallel",),
            vmem_limit_bytes=vmem_limit),
    )(z)

    # Combine the two branches + apply deferred normalization in the wrapper
    # (avoids both programs racing on one scalar output).
    std_loss = (parts[0, 0, 0] + parts[1, 0, 0]) * 0.5
    denom = jnp.float32((batch_size - 1) ** 2) * jnp.float32(out_dim)
    cov_loss = (parts[0, 0, 1] + parts[1, 0, 1]) / denom
    return std_coeff * std_loss + cov_coeff * cov_loss


def _reference(tea_reg_out, stu_reg_out, *, out_dim, std_coeff, cov_coeff,
               per_batch_size, global_ncrops=2):
    """Pure-JAX reference mirroring the PyTorch forward (world_size == 1)."""
    emb_dim = tea_reg_out.shape[1]
    batch_size = per_batch_size
    y3 = tea_reg_out.reshape(global_ncrops, -1, emb_dim).astype(jnp.float32)
    x3 = stu_reg_out.reshape(global_ncrops, -1, emb_dim).astype(jnp.float32)
    x = jnp.mean(x3, axis=0)
    y = jnp.mean(y3, axis=0)
    x = x - x.mean(axis=0)
    y = y - y.mean(axis=0)
    std_x = jnp.sqrt(jnp.var(x, axis=0, ddof=1) + 1e-4)
    std_y = jnp.sqrt(jnp.var(y, axis=0, ddof=1) + 1e-4)
    std_loss = (jnp.mean(jax.nn.relu(1 - std_x)) / 2
                + jnp.mean(jax.nn.relu(1 - std_y)) / 2)

    def off_diag_sq_sum(c):
        return jnp.sum(c ** 2) - jnp.sum(jnp.diag(c) ** 2)

    cov_x = x.T @ x / (batch_size - 1)
    cov_y = y.T @ y / (batch_size - 1)
    cov_loss = (off_diag_sq_sum(cov_x) / out_dim
                + off_diag_sq_sum(cov_y) / out_dim)
    return std_coeff * std_loss + cov_coeff * cov_loss


if __name__ == "__main__":
    # Small deterministic config: out_dim=32, per_batch=8, 2 global crops.
    out_dim = 32
    per_batch_size = 8
    global_ncrops = 2
    std_coeff = 25.0
    cov_coeff = 1.0

    key = jax.random.PRNGKey(0)
    k1, k2 = jax.random.split(key)
    tea_reg_out = jax.random.normal(
        k1, (global_ncrops * per_batch_size, out_dim), dtype=jnp.float32)
    stu_reg_out = jax.random.normal(
        k2, (global_ncrops * per_batch_size, out_dim), dtype=jnp.float32)

    loss = reg_loss(
        tea_reg_out, stu_reg_out,
        out_dim=out_dim, std_coeff=std_coeff, cov_coeff=cov_coeff,
        per_batch_size=per_batch_size, global_ncrops=global_ncrops)
    loss = jax.block_until_ready(loss)

    ref = _reference(
        tea_reg_out, stu_reg_out,
        out_dim=out_dim, std_coeff=std_coeff, cov_coeff=cov_coeff,
        per_batch_size=per_batch_size, global_ncrops=global_ncrops)
    assert jnp.allclose(loss, ref, rtol=1e-5, atol=1e-5), (loss, ref)

    print("KERNEL_OK")
</pallas_src>

<mosaic_0001>
module attributes {stable_mosaic.version = 11 : i64} {
  func.func @_reg_branch_kernel(%arg0: i32, %arg1: memref<1x2x8x128xf32, #tpu.memory_space<vmem>>, %arg2: memref<1x8x128xf32, #tpu.memory_space<vmem>>) attributes {dimension_semantics = [#tpu.dimension_semantics<parallel>], iteration_bounds = array<i64: 2>, scalar_prefetch = 0 : i64, scratch_operands = 0 : i64, tpu.core_type = #tpu.core_type<tc>, window_params = [{transform_indices = @transform_0, window_bounds = array<i64: 1, 2, 8, 128>}, {transform_indices = @transform_1, window_bounds = array<i64: 1, 8, 128>}]} {
    %c0 = arith.constant 0 : index
    %c0_0 = arith.constant 0 : index
    %c0_1 = arith.constant 0 : index
    %c0_2 = arith.constant 0 : index
    %0 = vector.load %arg1[%c0, %c0_0, %c0_1, %c0_2] : memref<1x2x8x128xf32, #tpu.memory_space<vmem>>, vector<1x1x8x128xf32>
    %1 = vector.shape_cast %0 : vector<1x1x8x128xf32> to vector<8x128xf32>
    %c0_3 = arith.constant 0 : index
    %c1 = arith.constant 1 : index
    %c0_4 = arith.constant 0 : index
    %c0_5 = arith.constant 0 : index
    %2 = vector.load %arg1[%c0_3, %c1, %c0_4, %c0_5] : memref<1x2x8x128xf32, #tpu.memory_space<vmem>>, vector<1x1x8x128xf32>
    %3 = vector.shape_cast %2 : vector<1x1x8x128xf32> to vector<8x128xf32>
    %4 = arith.addf %1, %3 : vector<8x128xf32>
    %cst = arith.constant 5.000000e-01 : f32
    %5 = vector.broadcast %cst : f32 to vector<8x128xf32>
    %6 = arith.mulf %4, %5 : vector<8x128xf32>
    %cst_6 = arith.constant dense<0.000000e+00> : vector<128xf32>
    %7 = vector.multi_reduction <add>, %6, %cst_6 [0] : vector<8x128xf32> to vector<128xf32>
    %8 = vector.shape_cast %7 : vector<128xf32> to vector<1x128xf32>
    %cst_7 = arith.constant 8.000000e+00 : f32
    %9 = vector.broadcast %cst_7 : f32 to vector<1x128xf32>
    %10 = arith.divf %8, %9 : vector<1x128xf32>
    %11 = vector.broadcast %10 : vector<1x128xf32> to vector<8x128xf32>
    %12 = arith.subf %6, %11 : vector<8x128xf32>
    %13 = arith.mulf %12, %12 : vector<8x128xf32>
    %cst_8 = arith.constant dense<0.000000e+00> : vector<128xf32>
    %14 = vector.multi_reduction <add>, %13, %cst_8 [0] : vector<8x128xf32> to vector<128xf32>
    %15 = vector.shape_cast %14 : vector<128xf32> to vector<1x128xf32>
    %cst_9 = arith.constant 1.000000e+00 : f32
    %cst_10 = arith.constant 7.000000e+00 : f32
    %16 = arith.divf %cst_9, %cst_10 : f32
    %17 = vector.broadcast %16 : f32 to vector<1x128xf32>
    %18 = arith.mulf %15, %17 : vector<1x128xf32>
    %cst_11 = arith.constant 9.99999974E-5 : f32
    %19 = vector.broadcast %cst_11 : f32 to vector<1x128xf32>
    %20 = arith.addf %18, %19 : vector<1x128xf32>
    %21 = math.sqrt %20 : vector<1x128xf32>
    %cst_12 = arith.constant 1.000000e+00 : f32
    %22 = vector.broadcast %cst_12 : f32 to vector<1x128xf32>
    %23 = arith.subf %22, %21 : vector<1x128xf32>
    %cst_13 = arith.constant 0.000000e+00 : f32
    %24 = vector.broadcast %cst_13 : f32 to vector<1x128xf32>
    %25 = arith.maximumf %23, %24 : vector<1x128xf32>
    %26 = tpu.iota {dimensions = array<i32: 1>} : vector<1x128xi32>
    %c32_i32 = arith.constant 32 : i32
    %27 = vector.broadcast %c32_i32 : i32 to vector<1x128xi32>
    %28 = arith.cmpi slt, %26, %27 : vector<1x128xi32>
    %cst_14 = arith.constant 0.000000e+00 : f32
    %29 = vector.broadcast %cst_14 : f32 to vector<1x128xf32>
    %30 = arith.select %28, %25, %29 : vector<1x128xi1>, vector<1x128xf32>
    %31 = vector.shape_cast %30 : vector<1x128xf32> to vector<1x1x128xf32>
    %cst_15 = arith.constant dense<0.000000e+00> : vector<1xf32>
    %32 = vector.multi_reduction <add>, %31, %cst_15 [1, 2] : vector<1x1x128xf32> to vector<1xf32>
    %33 = vector.shape_cast %32 : vector<1xf32> to vector<1x1x1xf32>
    %34 = vector.extract %33[0, 0, 0] : f32 from vector<1x1x1xf32>
    %cst_16 = arith.constant 3.200000e+01 : f32
    %35 = arith.divf %34, %cst_16 : f32
    %cst_17 = arith.constant dense<0.000000e+00> : vector<128x128xf32>
    %36 = tpu.matmul %12, %12, %cst_17 {dimension_numbers = #tpu.dot_dimension_numbers<[0], [0], [1], [1], [0, 1, 1, 1], [], []>, precision = #tpu.contract_precision<fp32>} : vector<8x128xf32>, vector<8x128xf32>, vector<128x128xf32> -> vector<128x128xf32>
    %37 = arith.mulf %36, %36 : vector<128x128xf32>
    %38 = vector.shape_cast %37 : vector<128x128xf32> to vector<1x128x128xf32>
    %cst_18 = arith.constant dense<0.000000e+00> : vector<1xf32>
    %39 = vector.multi_reduction <add>, %38, %cst_18 [1, 2] : vector<1x128x128xf32> to vector<1xf32>
    %40 = vector.shape_cast %39 : vector<1xf32> to vector<1x1x1xf32>
    %41 = vector.extract %40[0, 0, 0] : f32 from vector<1x1x1xf32>
    %42 = arith.mulf %15, %15 : vector<1x128xf32>
    %43 = vector.shape_cast %42 : vector<1x128xf32> to vector<1x1x128xf32>
    %cst_19 = arith.constant dense<0.000000e+00> : vector<1xf32>
    %44 = vector.multi_reduction <add>, %43, %cst_19 [1, 2] : vector<1x1x128xf32> to vector<1xf32>
    %45 = vector.shape_cast %44 : vector<1xf32> to vector<1x1x1xf32>
    %46 = vector.extract %45[0, 0, 0] : f32 from vector<1x1x1xf32>
    %47 = arith.subf %41, %46 : f32
    %48 = tpu.iota {dimensions = array<i32: 1>} : vector<8x128xi32>
    %c0_i32 = arith.constant 0 : i32
    %49 = vector.broadcast %c0_i32 : i32 to vector<8x128xi32>
    %50 = arith.cmpi eq, %48, %49 : vector<8x128xi32>
    %c1_i32 = arith.constant 1 : i32
    %51 = vector.broadcast %c1_i32 : i32 to vector<8x128xi32>
    %52 = arith.cmpi eq, %48, %51 : vector<8x128xi32>
    %cst_20 = arith.constant 0.000000e+00 : f32
    %53 = vector.broadcast %47 : f32 to vector<8x128xf32>
    %54 = vector.broadcast %cst_20 : f32 to vector<8x128xf32>
    %55 = arith.select %52, %53, %54 : vector<8x128xi1>, vector<8x128xf32>
    %56 = vector.broadcast %35 : f32 to vector<8x128xf32>
    %57 = arith.select %50, %56, %55 : vector<8x128xi1>, vector<8x128xf32>
    %c0_21 = arith.constant 0 : index
    %c0_22 = arith.constant 0 : index
    %c0_23 = arith.constant 0 : index
    %58 = vector.load %arg2[%c0_21, %c0_22, %c0_23] : memref<1x8x128xf32, #tpu.memory_space<vmem>>, vector<1x8x128xf32>
    %59 = vector.shape_cast %58 : vector<1x8x128xf32> to vector<8x128xf32>
    %60 = vector.shape_cast %57 : vector<8x128xf32> to vector<1x8x128xf32>
    tpu.vector_store %arg2[%c0_21, %c0_22, %c0_23], %60 {strides = array<i32>} : memref<1x8x128xf32, #tpu.memory_space<vmem>>, vector<1x8x128xf32>,
    return
  }
  func.func @transform_0(%arg0: i32) -> (i32, i32, i32, i32) {
    %c0_i32 = arith.constant 0 : i32
    %c0_i32_0 = arith.constant 0 : i32
    %c0_i32_1 = arith.constant 0 : i32
    %c0_i32_2 = arith.constant 0 : i32
    return %arg0, %c0_i32, %c0_i32_0, %c0_i32_1 : i32, i32, i32, i32
  }
  func.func @transform_1(%arg0: i32) -> (i32, i32, i32) {
    %c0_i32 = arith.constant 0 : i32
    %c0_i32_0 = arith.constant 0 : i32
    %c0_i32_1 = arith.constant 0 : i32
    return %arg0, %c0_i32, %c0_i32_0 : i32, i32, i32
  }
}

</mosaic_0001>

<bundles_post_ra>
// kernel: tpu_custom_call.1
= control target key start
LH: loop header
LB: loop body
LE: loop exit
PB: predicated region body
PF: predicated region fallthrough
CT: control target
= control target key end

     0   :  { %6 = vsyncpa [#allocation3], 0  ;;  %s2409_s0 = inlined_call_operand.hbm [shape: f32[2,2,8,128], index: 0, kind: input, shape index: {}]   ;;  %s2410_s1 = inlined_call_operand.hbm [shape: f32[2,8,128], index: 1, kind: output, shape index: {}]  }
   0x1   :  { %8 = vsyncpa [#allocation3 + $0x1], 0 }
   0x2   :  { %9 = vsyncpa [#allocation4], 0 }
   0x3   :  { %11 = vsyncpa [#allocation4 + $0x1], 0  ;;  %s2022_s6 = smov 0   ;;  %s2024_s7 = smov 0  }
   0x4   :  { %s2026_s8 = smov 0   ;;  %s2028_s9 = smov 0  }
   0x5 LB: > { %s2043_s10 = sadd.s32 4294967295, %s2006_s9   ;;  %s1500_s11 = sadd.s32 4294967294, %s2006_s9   ;;  %s2006_s9 = sphi %s2028_s9, %s2423_s9   ;;  %s2002_s8 = sphi %s2026_s8, %s2422_s8   ;;  %s1998_s7 = sphi %s2024_s7, %s2421_s7   ;;  %s1994_s6 = sphi %s2022_s6, %s2420_s6  }
   0x6   : > { %s2047_s12 = sadd.s32 1, %s2006_s9   ;;  %s24_s13 = sadd.s32 1, %s2002_s8 }
   0x7   : > { %s21_s14 = ssub.s32 %s2006_s9, %s2047_s12  ;;  %p31_p0 = scmp.ne.s32.totalorder %s2002_s8, %s1998_s7 }
   0x8   : > { %p22_p1 = scmp.eq.s32.totalorder %s21_s14, 0  ;;  %p32_p2 = scmp.eq.s32.totalorder %s2006_s9, 0 }
   0x9   : > { %p37_p3 = scmp.ne.s32.totalorder %s1998_s7, %s1994_s6  ;;  %p38_p4 = scmp.eq.s32.totalorder %s2043_s10, 0 }
   0xa   : > { %s2059_s15 = scalar_select %p22_p1, %s2002_s8, %s24_s13  }
   0xb   : > { %p2061_p5 = por %p32_p2, %p31_p0  ;;  %p2065_p6 = por %p38_p4, %p37_p3 }
   0xc   : > { %p61_p7 = scmp.eq.s32.totalorder %s2043_s10, 1  ;;  %p67_p8 = scmp.eq.s32.totalorder %s1500_s11, 1 }
   0xd   : > { %p1871_p10 = scmp.lt.s32.totalorder %s2006_s9, 2  ;;  %s87_s20 = sand.u32 1, %s2002_s8  }
   0xe   : > { %p2072_p11 = por %p61_p7, %p31_p0  ;;  %p2076_p12 = por %p67_p8, %p37_p3 }
   0xf   : > { %s1514_s21 = sshll.u32 %s2006_s9, 8  ;;  %s1503_s22 = sshll.u32 %s87_s20, 4 }
  0x10   : > { %s2414_s18 = scalar_select %p2072_p11, 1, 0 }
  0x11   : > { %s2415_s19 = scalar_select %p2076_p12, 1, 0 }
  0x12   : > { %s2085_s25 = scalar_lea.hbm %s2409_s0, %s1514_s21  ;;  %s91_s26 = scalar_lea.vmem [#allocation2], %s1503_s22 }
  0x13   : > { %s98_s27 = sshll.u32 %s91_s26, 4  ;;  %p2089_p13 = pnand %p1871_p10, %p2061_p5  ;;  %s2093_s27 = int_to_ptr.vmem [resolvable:$true] %s98_s27 }
  0x14   : > { %s2095_s29 = scalar_lea.sflag [#allocation3], %s87_s20  ;;  %s1910_s30 = scalar_lea.hbm %s2085_s25, 256 }
  0x15   : > { %p1911_p0 = scmp.ne.s32.totalorder %s2085_s25, %s1910_s30  ;;  %p1912_p1 = pneg %p2089_p13 }
  0x16   : > { %s1915_s4 = scalar_lea.hbm %s2409_s0, 512  ;;  %p1916_p4 = scmp.lt.u32.totalorder %s2085_s25, %s2409_s0 }
  0x17   : > { %p1913_p2 = pnand %p1912_p1, %p1911_p0  ;;  %p1917_p5 = scmp.lt.u32.totalorder %s1915_s4, %s1910_s30 }
  0x18   : > { %p1919_p8 = scmp.lt.u32.totalorder %s1910_s30, %s2085_s25 }
  0x19   : > { %p1914_p3 = pneg %p1913_p2  ;;  %p1918_p7 = por %p1917_p5, %p1916_p4 }
  0x1b   : > { %p1920_p10 = por %p1919_p8, %p1918_p7 }
  0x1d   : > { %p1921_p9 = pnand %p1920_p10, %p1914_p3 }
  0x1f   : > { %1924 = shalt.err (!%p1921_p9)
}
  0x20   : > { %s1925_s13 = scalar_lea.vmem %s2093_s27, 256  ;;  %s2008_s14 = smov [#allocation2]  }
  0x21   : > { %p1926_p0 = scmp.ne.s32.totalorder %s2093_s27, %s1925_s13  ;;  %s1930_s16 = sshll.u32 %s2008_s14, 4  ;;  %s1931_s16 = int_to_ptr.vmem [resolvable:$false] %s1930_s16 }
  0x22   : > { %s1932_s20 = scalar_lea.vmem %s1931_s16, 512  ;;  %p1933_p11 = scmp.lt.s32.totalorder %s2093_s27, %s1931_s16 }
  0x23   : > { %p1928_p2 = pnand %p1926_p0, %p1912_p1  ;;  %p1934_p4 = scmp.lt.s32.totalorder %s1932_s20, %s1925_s13 }
  0x25   : > { %p1929_p12 = pneg %p1928_p2  ;;  %p1935_p5 = por %p1934_p4, %p1933_p11 }
  0x27   : > { %p1936_p7 = pnand %p1935_p5, %p1929_p12 }
  0x29   : > { %1939 = shalt.err (!%p1936_p7)
}
  0x2a   : > { %s2009_s21 = smov 128   ;;  %s2010_s22 = smov 8  }
  0x2b   : > { %1866 = dma.hbm_to_vmem [thread:$0]  (!%p2089_p13), %s2085_s25, 256, %s2093_s27, %s2095_s29, %s2009_s21, %s2009_s21, %s2010_s22  }
  0x2c   : > { %p1506_p9 = scmp.ge.s32.totalorder %s2006_s9, 1  ;;  %p106_p1 = scmp.lt.s32.totalorder %s2006_s9, 3 }
  0x2e   : > { %p107_p3 = pnand %p1506_p9, %p106_p1 }
  0x2f   : > { %s2126_s23 = sand.u32 (!%p107_p3), 1, %s1998_s7  }
  0x30   : > { %110 = sbr.rel (%p107_p3) target bundleno = 789 (0x315), region = 24  ;;  %s1507_s24 = sshll.u32 (!%p107_p3), %s2126_s23, 4 }
  0x31   : > { %s113_s26 = scalar_lea.sflag (!%p107_p3), [#allocation3], %s2126_s23  ;;  %s116_s30 = scalar_lea.vmem (!%p107_p3), [#allocation2], %s1507_s24 }
  0x37   : > { %1985 = dma.done.wait (%p2065_p6), %s113_s26, 256  }
  0x38   : > { %1987 = vsyncadd (%p2065_p6), %s113_s26, 4294967040  ;;  %v135_v0 = vld [vmem:[%s116_s30] sm:$0xff]  ;;  %v1509_v1 = vld [vmem:[%s116_s30 + $0x8] sm:$0xff]  ;;  %vm217_vm0 = vcmask 64512   ;;  %vm171_vm3 = vcmask 1040384   ;;  %s1508_s17 = sshll.u32 %s2126_s23, 3 }
  0x39   : > { %v138_v2 = vadd.f32 %v1509_v1, %v135_v0  ;;  %s1511_s2 = sshll.u32 %s2043_s10, 7  ;;  %s134_s4 = scalar_lea.vmem [#allocation5], %s1508_s17 }
  0x3a   : > { %s1430_s5 = sshll.u32 %s134_s4, 4  ;;  %s2365_s14 = scalar_lea.hbm %s2410_s1, %s1511_s2  ;;  %s2367_s5 = int_to_ptr.vmem [resolvable:$true] %s1430_s5 }
  0x3b   : > { %v139_v3 = vmul.f32 0.5, %v138_v2  ;;  %s1417_s10 = scalar_lea.sflag [#allocation4], %s2126_s23  ;;  %s1940_s16 = scalar_lea.vmem %s2367_s5, 128 }
  0x3c   : > { %p1941_p6 = scmp.ne.s32.totalorder %s2367_s5, %s1940_s16  ;;  %p2417_p11 = scmp.ne.s32.totalorder %s2414_s18, 0 }
  0x3d   : > { %v140_v4 = vrot.slane %v139_v3, 4  ;;  %s2011_s20 = smov [#allocation5]  }
  0x3e   : > { %p1942_p12 = pnand %p1941_p6, %p2417_p11  ;;  %s1944_s21 = sshll.u32 %s2011_s20, 4  ;;  %s1945_s21 = int_to_ptr.vmem [resolvable:$false] %s1944_s21 }
  0x3f   : > { %v141_v5 = vadd.f32 %v140_v4, %v139_v3  ;;  %s1946_s22 = scalar_lea.vmem %s1945_s21, 256  ;;  %p1947_p8 = scmp.lt.s32.totalorder %s2367_s5, %s1945_s21 }
  0x40   : > { %p1943_p13 = pneg %p1942_p12  ;;  %p1948_p10 = scmp.lt.s32.totalorder %s1946_s22, %s1940_s16 }
  0x41   : > { %v142_v6 = vrot.slane %v141_v5, 2 }
  0x42   : > { %p1949_p0 = por %p1948_p10, %p1947_p8 }
  0x43   : > { %v143_v7 = vadd.f32 %v142_v6, %v141_v5 }
  0x44   : > { %p1950_p2 = pnand %p1949_p0, %p1943_p13 }
  0x45   : > { %v144_v8 = vrot.slane %v143_v7, 1 }
  0x47   : > { %v145_v9 = vadd.f32 %v144_v8, %v143_v7 }
  0x49   : > { %v147_v10 = vmul.f32 0.125, %v145_v9 }
  0x4b   : > { %v2134_v11 = vsub.f32 %v139_v3, %v147_v10 }
  0x4d   : > { %185 = vxpose.xlu0.b32.start.end [1/1] (short) %v2134_v11, 128  ;;  %v2138_v12 = vand.u32 4294901760, %v2134_v11 }
  0x4f   : > { %1695 = vmatprep.subr.mxu0 %v2138_v12  ;;  %1617 = vmatprep.subr.mxu1 %v2138_v12  ;;  %v2146_v13 = vsub.f32 %v2134_v11, %v2138_v12 }
  0x50   : > { %1696 = vmatpush3.msra.mxu0 %v2138_v12  ;;  %1618 = vmatpush3.msra.mxu1 %v2138_v12 }
  0x51   : > { %v495_v14 = vand.u32 4294901760, %v2146_v13 }
  0x53   : > { %v496_v15 = vsub.f32 %v2146_v13, %v495_v14  ;;  %1721 = vmatprep.subr.mxu0 %v495_v14 }
  0x55   : > { %v497_v16 = vand.u32 4294901760, %v496_v15 }
  0x57   : > { %1643 = vmatprep.subr.mxu1 %v497_v16 }
  0xcd   : > { %v201_v17 = vpop.trf.xlu0 }
  0xce   : > { %v219_v18 = vsel %vm217_vm0, %v201_v17, 0 }
  0xcf   : > { %v2151_v19 = vand.u32 4294901760, %v219_v18 }
  0xd1   : > { %v2154_v20 = vsub.f32 %v219_v18, %v2151_v19  ;;  %v202_v21 = vpop.trf.xlu0 }
  0xd2   : > { %v222_v22 = vsel %vm217_vm0, %v202_v21, 0 }
  0xd3   : > { %v2157_v23 = vand.u32 4294901760, %v222_v22  ;;  %v334_v24 = vand.u32 4294901760, %v2154_v20 }
  0xd5   : > { %v2161_v25 = vsub.f32 %v222_v22, %v2157_v23  ;;  %1697 = vmatprep.mubr.f32.mxu0 %v334_v24  ;;  %v203_v26 = vpop.trf.xlu0  ;;  %v335_v27 = vsub.f32 %v2154_v20, %v334_v24 }
  0xd6   : > { %v225_v28 = vsel %vm217_vm0, %v203_v26, 0 }
  0xd7   : > { %v2165_v29 = vand.u32 4294901760, %v225_v28  ;;  %v336_v30 = vand.u32 4294901760, %v335_v27  ;;  %v344_v31 = vand.u32 4294901760, %v2161_v25 }
  0xd9   : > { %v2169_v32 = vsub.f32 %v225_v28, %v2165_v29  ;;  %1619 = vmatprep.mubr.f32.mxu1 %v336_v30  ;;  %v204_v33 = vpop.trf.xlu0  ;;  %1698 = vmatmul.mubr.f32.vlgmr.msra.gmra.mrb[0].mxu0 %v344_v31  ;;  %v345_v34 = vsub.f32 %v2161_v25, %v344_v31 }
  0xda   : > { %v228_v35 = vsel %vm217_vm0, %v204_v33, 0  ;;  %1722 = vmatpush3.msra.mxu0 %v495_v14 }
  0xdb   : > { %v2173_v36 = vand.u32 4294901760, %v228_v35  ;;  %v346_v37 = vand.u32 4294901760, %v345_v34  ;;  %v354_v38 = vand.u32 4294901760, %v2169_v32  ;;  %1747 = vmatprep.subr.mxu0 %v2138_v12 }
  0xdd   : > { %v2178_v39 = vsub.f32 %v228_v35, %v2173_v36  ;;  %v205_v40 = vpop.trf.xlu0  ;;  %1620 = vmatmul.mubr.f32.vlgmr.msra.gmra.mrb[0].mxu1 %v346_v37  ;;  %1700 = vmatprep.mubr.f32.mxu0 %v354_v38  ;;  %v355_v41 = vsub.f32 %v2169_v32, %v354_v38 }
  0xde   : > { %v231_v42 = vsel %vm217_vm0, %v205_v40, 0  ;;  %1644 = vmatpush3.msra.mxu1 %v497_v16 }
  0xdf   : > { %v2182_v43 = vand.u32 4294901760, %v231_v42  ;;  %v356_v44 = vand.u32 4294901760, %v355_v41  ;;  %v364_v45 = vand.u32 4294901760, %v2178_v39  ;;  %1669 = vmatprep.subr.mxu1 %v2146_v13 }
  0xe1   : > { %v2187_v46 = vsub.f32 %v231_v42, %v2182_v43  ;;  %v206_v47 = vpop.trf.xlu0  ;;  %1622 = vmatprep.mubr.f32.mxu1 %v356_v44  ;;  %1701 = vmatmul.mubr.f32.gmra.mrb[2].mxu0 %v364_v45  ;;  %v365_v48 = vsub.f32 %v2178_v39, %v364_v45 }
  0xe2   : > { %v234_v49 = vsel %vm217_vm0, %v206_v47, 0 }
  0xe3   : > { %v2191_v50 = vand.u32 4294901760, %v234_v49  ;;  %v366_v51 = vand.u32 4294901760, %v365_v48  ;;  %v374_v52 = vand.u32 4294901760, %v2187_v46 }
  0xe5   : > { %v2195_v53 = vsub.f32 %v234_v49, %v2191_v50  ;;  %v207_v54 = vpop.trf.xlu0  ;;  %1623 = vmatmul.mubr.f32.gmra.mrb[2].mxu1 %v366_v51  ;;  %1703 = vmatprep.mubr.f32.mxu0 %v374_v52  ;;  %v375_v55 = vsub.f32 %v2187_v46, %v374_v52 }
  0xe6   : > { %v237_v56 = vsel %vm217_vm0, %v207_v54, 0 }
  0xe7   : > { %v2199_v57 = vand.u32 4294901760, %v237_v56  ;;  %v376_v58 = vand.u32 4294901760, %v375_v55  ;;  %v384_v59 = vand.u32 4294901760, %v2195_v53 }
  0xe9   : > { %v2203_v60 = vsub.f32 %v237_v56, %v2199_v57  ;;  %v208_v61 = vpop.trf.xlu0  ;;  %1625 = vmatprep.mubr.f32.mxu1 %v376_v58  ;;  %1704 = vmatmul.mubr.f32.gmra.mrb[4].mxu0 %v384_v59  ;;  %v385_v62 = vsub.f32 %v2195_v53, %v384_v59 }
  0xea   : > { %v240_v63 = vsel %vm217_vm0, %v208_v61, 0 }
  0xeb   : > { %v2207_v0 = vand.u32 4294901760, %v240_v63  ;;  %v386_v1 = vand.u32 4294901760, %v385_v62  ;;  %v394_v2 = vand.u32 4294901760, %v2203_v60 }
  0xed   : > { %v2211_v3 = vsub.f32 %v240_v63, %v2207_v0  ;;  %v209_v4 = vpop.trf.xlu0  ;;  %1626 = vmatmul.mubr.f32.gmra.mrb[4].mxu1 %v386_v1  ;;  %1706 = vmatprep.mubr.f32.mxu0 %v394_v2  ;;  %v395_v5 = vsub.f32 %v2203_v60, %v394_v2 }
  0xee   : > { %v243_v6 = vsel %vm217_vm0, %v209_v4, 0 }
  0xef   : > { %v2215_v7 = vand.u32 4294901760, %v243_v6  ;;  %v396_v8 = vand.u32 4294901760, %v395_v5  ;;  %v404_v9 = vand.u32 4294901760, %v2211_v3 }
  0xf1   : > { %v2219_v10 = vsub.f32 %v243_v6, %v2215_v7  ;;  %v210_v14 = vpop.trf.xlu0  ;;  %1628 = vmatprep.mubr.f32.mxu1 %v396_v8  ;;  %1707 = vmatmul.mubr.f32.gmra.mrb[6].mxu0 %v404_v9  ;;  %v405_v15 = vsub.f32 %v2211_v3, %v404_v9 }
  0xf2   : > { %v246_v16 = vsel %vm217_vm0, %v210_v14, 0 }
  0xf3   : > { %v2223_v17 = vand.u32 4294901760, %v246_v16  ;;  %v406_v18 = vand.u32 4294901760, %v405_v15  ;;  %v414_v21 = vand.u32 4294901760, %v2219_v10 }
  0xf5   : > { %v2227_v22 = vsub.f32 %v246_v16, %v2223_v17  ;;  %v211_v24 = vpop.trf.xlu0  ;;  %1629 = vmatmul.mubr.f32.gmra.mrb[6].mxu1 %v406_v18  ;;  %1709 = vmatprep.mubr.f32.mxu0 %v414_v21  ;;  %v415_v26 = vsub.f32 %v2219_v10, %v414_v21 }
  0xf6   : > { %v249_v27 = vsel %vm217_vm0, %v211_v24, 0 }
  0xf7   : > { %v2231_v28 = vand.u32 4294901760, %v249_v27  ;;  %v416_v30 = vand.u32 4294901760, %v415_v26  ;;  %v424_v31 = vand.u32 4294901760, %v2227_v22 }
  0xf9   : > { %v2235_v33 = vsub.f32 %v249_v27, %v2231_v28  ;;  %v212_v34 = vpop.trf.xlu0  ;;  %1631 = vmatprep.mubr.f32.mxu1 %v416_v30  ;;  %1710 = vmatmul.mubr.f32.gmra.mrb[8].mxu0 %v424_v31  ;;  %v425_v35 = vsub.f32 %v2227_v22, %v424_v31 }
  0xfa   : > { %v252_v37 = vsel %vm217_vm0, %v212_v34, 0 }
  0xfb   : > { %v2239_v38 = vand.u32 4294901760, %v252_v37  ;;  %v426_v40 = vand.u32 4294901760, %v425_v35  ;;  %v434_v41 = vand.u32 4294901760, %v2235_v33 }
  0xfd   : > { %v2243_v42 = vsub.f32 %v252_v37, %v2239_v38  ;;  %v213_v44 = vpop.trf.xlu0  ;;  %1632 = vmatmul.mubr.f32.gmra.mrb[8].mxu1 %v426_v40  ;;  %1712 = vmatprep.mubr.f32.mxu0 %v434_v41  ;;  %v435_v45 = vsub.f32 %v2235_v33, %v434_v41 }
  0xfe   : > { %v255_v47 = vsel %vm217_vm0, %v213_v44, 0 }
  0xff   : > { %v2247_v48 = vand.u32 4294901760, %v255_v47  ;;  %v436_v49 = vand.u32 4294901760, %v435_v45  ;;  %v444_v51 = vand.u32 4294901760, %v2243_v42 }
 0x101   : > { %v2251_v52 = vsub.f32 %v255_v47, %v2247_v48  ;;  %v214_v54 = vpop.trf.xlu0  ;;  %1634 = vmatprep.mubr.f32.mxu1 %v436_v49  ;;  %1713 = vmatmul.mubr.f32.gmra.mrb[10].mxu0 %v444_v51  ;;  %v445_v55 = vsub.f32 %v2243_v42, %v444_v51 }
 0x102   : > { %v258_v56 = vsel %vm217_vm0, %v214_v54, 0 }
 0x103   : > { %v2255_v58 = vand.u32 4294901760, %v258_v56  ;;  %v446_v59 = vand.u32 4294901760, %v445_v55  ;;  %v454_v61 = vand.u32 4294901760, %v2251_v52 }
 0x105   : > { %v2259_v62 = vsub.f32 %v258_v56, %v2255_v58  ;;  %v215_v63 = vpop.trf.xlu0  ;;  %1635 = vmatmul.mubr.f32.gmra.mrb[10].mxu1 %v446_v59  ;;  %1715 = vmatprep.mubr.f32.mxu0 %v454_v61  ;;  %v455_v1 = vsub.f32 %v2251_v52, %v454_v61 }
 0x106   : > { %v261_v2 = vsel %vm217_vm0, %v215_v63, 0 }
 0x107   : > { %v2263_v4 = vand.u32 4294901760, %v261_v2  ;;  %v456_v5 = vand.u32 4294901760, %v455_v1  ;;  %v464_v6 = vand.u32 4294901760, %v2259_v62 }
 0x109   : > { %v2267_v8 = vsub.f32 %v261_v2, %v2263_v4  ;;  %v216_v9 = vpop.trf.xlu0  ;;  %1637 = vmatprep.mubr.f32.mxu1 %v456_v5  ;;  %1716 = vmatmul.mubr.f32.gmra.mrb[12].mxu0 %v464_v6  ;;  %v465_v14 = vsub.f32 %v2259_v62, %v464_v6 }
 0x10a   : > { %v264_v15 = vsel %vm217_vm0, %v216_v9, 0 }
 0x10b   : > { %v2271_v16 = vand.u32 4294901760, %v264_v15  ;;  %v466_v18 = vand.u32 4294901760, %v465_v14  ;;  %v474_v21 = vand.u32 4294901760, %v2267_v8 }
 0x10d   : > { %v2275_v24 = vsub.f32 %v264_v15, %v2271_v16  ;;  %1638 = vmatmul.mubr.f32.gmra.mrb[12].mxu1 %v466_v18  ;;  %1718 = vmatprep.mubr.f32.mxu0 %v474_v21  ;;  %v475_v26 = vsub.f32 %v2267_v8, %v474_v21 }
 0x10f   : > { %v476_v27 = vand.u32 4294901760, %v475_v26  ;;  %v484_v30 = vand.u32 4294901760, %v2275_v24 }
 0x111   : > { %1640 = vmatprep.mubr.f32.mxu1 %v476_v27  ;;  %1719 = vmatmul.mubr.f32.gmra.mrb[14].mxu0 %v484_v30  ;;  %v485_v31 = vsub.f32 %v2275_v24, %v484_v30 }
 0x112   : > { %1723 = vmatprep.mubr.f32.mxu0 %v2151_v19 }
 0x113   : > { %v486_v34 = vand.u32 4294901760, %v485_v31 }
 0x115   : > { %1641 = vmatmul.mubr.f32.gmra.mrb[14].mxu1 %v486_v34  ;;  %1724 = vmatmul.mubr.f32.vlgmr.msra.gmra.mrb[0].mxu0 %v2157_v23 }
 0x116   : > { %1645 = vmatprep.mubr.f32.mxu1 %v2151_v19  ;;  %1726 = vmatprep.mubr.f32.mxu0 %v2165_v29 }
 0x117   : > { %1748 = vmatpush3.msra.mxu0 %v2138_v12  ;;  %v149_v12 = vmul.f32 %v2134_v11, %v2134_v11 }
 0x119   : > { %1646 = vmatmul.mubr.f32.vlgmr.msra.gmra.mrb[0].mxu1 %v2157_v23  ;;  %1727 = vmatmul.mubr.f32.gmra.mrb[2].mxu0 %v2173_v36 }
 0x11a   : > { %1670 = vmatpush3.msra.mxu1 %v2146_v13  ;;  %1648 = vmatprep.mubr.f32.mxu1 %v2165_v29  ;;  %v150_v13 = vrot.slane %v149_v12, 4 }
 0x11b   : > { %1729 = vmatprep.mubr.f32.mxu0 %v2182_v43 }
 0x11d   : > { %1649 = vmatmul.mubr.f32.gmra.mrb[2].mxu1 %v2173_v36  ;;  %1730 = vmatmul.mubr.f32.gmra.mrb[4].mxu0 %v2191_v50 }
 0x11e   : > { %1651 = vmatprep.mubr.f32.mxu1 %v2182_v43  ;;  %1732 = vmatprep.mubr.f32.mxu0 %v2199_v57 }
 0x121   : > { %1652 = vmatmul.mubr.f32.gmra.mrb[4].mxu1 %v2191_v50  ;;  %1733 = vmatmul.mubr.f32.gmra.mrb[6].mxu0 %v2207_v0 }
 0x122   : > { %1654 = vmatprep.mubr.f32.mxu1 %v2199_v57  ;;  %1735 = vmatprep.mubr.f32.mxu0 %v2215_v7 }
 0x125   : > { %1655 = vmatmul.mubr.f32.gmra.mrb[6].mxu1 %v2207_v0  ;;  %1736 = vmatmul.mubr.f32.gmra.mrb[8].mxu0 %v2223_v17 }
 0x126   : > { %1657 = vmatprep.mubr.f32.mxu1 %v2215_v7  ;;  %1738 = vmatprep.mubr.f32.mxu0 %v2231_v28 }
 0x129   : > { %1658 = vmatmul.mubr.f32.gmra.mrb[8].mxu1 %v2223_v17  ;;  %1739 = vmatmul.mubr.f32.gmra.mrb[10].mxu0 %v2239_v38 }
 0x12a   : > { %1660 = vmatprep.mubr.f32.mxu1 %v2231_v28  ;;  %1741 = vmatprep.mubr.f32.mxu0 %v2247_v48 }
 0x12d   : > { %1661 = vmatmul.mubr.f32.gmra.mrb[10].mxu1 %v2239_v38  ;;  %1742 = vmatmul.mubr.f32.gmra.mrb[12].mxu0 %v2255_v58 }
 0x12e   : > { %1663 = vmatprep.mubr.f32.mxu1 %v2247_v48  ;;  %1744 = vmatprep.mubr.f32.mxu0 %v2263_v4 }
 0x131   : > { %1664 = vmatmul.mubr.f32.gmra.mrb[12].mxu1 %v2255_v58  ;;  %1745 = vmatmul.mubr.f32.gmra.mrb[14].mxu0 %v2271_v16 }
 0x132   : > { %1666 = vmatprep.mubr.f32.mxu1 %v2263_v4  ;;  %1749 = vmatprep.mubr.f32.mxu0 %v2151_v19  ;;  %v151_v19 = vadd.f32 %v150_v13, %v149_v12 }
 0x135   : > { %1667 = vmatmul.mubr.f32.gmra.mrb[14].mxu1 %v2271_v16  ;;  %1750 = vmatmul.mubr.f32.vlgmr.msra.gmra.mrb[0].mxu0 %v2157_v23 }
 0x136   : > { %1671 = vmatprep.mubr.f32.mxu1 %v2154_v20  ;;  %1752 = vmatprep.mubr.f32.mxu0 %v2165_v29  ;;  %v152_v20 = vrot.slane %v151_v19, 2 }
 0x138   : > { %v153_v23 = vadd.f32 %v152_v20, %v151_v19 }
 0x139   : > { %1672 = vmatmul.mubr.f32.vlgmr.msra.gmra.mrb[0].mxu1 %v2161_v25  ;;  %1753 = vmatmul.mubr.f32.gmra.mrb[2].mxu0 %v2173_v36 }
 0x13a   : > { %1674 = vmatprep.mubr.f32.mxu1 %v2169_v32  ;;  %1755 = vmatprep.mubr.f32.mxu0 %v2182_v43  ;;  %v154_v25 = vrot.slane %v153_v23, 1 }
 0x13c   : > { %v2348_v29 = vadd.f32 %v154_v25, %v153_v23 }
 0x13d   : > { %1675 = vmatmul.mubr.f32.gmra.mrb[2].mxu1 %v2178_v39  ;;  %1756 = vmatmul.mubr.f32.gmra.mrb[4].mxu0 %v2191_v50 }
 0x13e   : > { %1677 = vmatprep.mubr.f32.mxu1 %v2187_v46  ;;  %1758 = vmatprep.mubr.f32.mxu0 %v2199_v57  ;;  %v156_v32 = vmul.f32 0.14285715, %v2348_v29  ;;  %v167_v57 = vlaneseq }
 0x140   : > { %v157_v36 = vadd.f32 0.0001, %v156_v32 }
 0x141   : > { %1678 = vmatmul.mubr.f32.gmra.mrb[4].mxu1 %v2195_v53  ;;  %1759 = vmatmul.mubr.f32.gmra.mrb[6].mxu0 %v2207_v0 }
 0x142   : > { %1680 = vmatprep.mubr.f32.mxu1 %v2203_v60  ;;  %1761 = vmatprep.mubr.f32.mxu0 %v2215_v7  ;;  %1908 = vrsqrt.f32 %v157_v36  ;;  %vm160_vm1 = vcmp.eq.f32.partialorder %v157_v36, inf  ;;  %v163_v46 = vand.u32 2147483648, %v157_v36  ;;  %vm162_vm2 = vcmp.eq.f32.partialorder %v157_v36, 0.0 }
 0x143   : > { %v2351_v60 = vand.u32 127, %v167_v57 }
 0x145   : > { %1681 = vmatmul.mubr.f32.gmra.mrb[6].mxu1 %v2211_v3  ;;  %1762 = vmatmul.mubr.f32.gmra.mrb[8].mxu0 %v2223_v17  ;;  %vm169_vm4 = vcmp.lt.s32.totalorder %v2351_v60, 32  ;;  %vm1410_vm5 = vcmp.eq.s32.totalorder %v2351_v60, 1  ;;  %vm1409_vm6 = vcmp.eq.s32.totalorder %v2351_v60, 0 }
 0x146   : > { %1683 = vmatprep.mubr.f32.mxu1 %v2219_v10  ;;  %1764 = vmatprep.mubr.f32.mxu0 %v2231_v28 }
 0x149   : > { %1684 = vmatmul.mubr.f32.gmra.mrb[8].mxu1 %v2227_v22  ;;  %1765 = vmatmul.mubr.f32.gmra.mrb[10].mxu0 %v2239_v38 }
 0x14a   : > { %1686 = vmatprep.mubr.f32.mxu1 %v2235_v33  ;;  %1767 = vmatprep.mubr.f32.mxu0 %v2247_v48 }
 0x14c   : > { %v1909_v39 = vpop.eup %1908 }
 0x14d   : > { %1687 = vmatmul.mubr.f32.gmra.mrb[10].mxu1 %v2243_v42  ;;  %1768 = vmatmul.mubr.f32.gmra.mrb[12].mxu0 %v2255_v58  ;;  %v159_v43 = vmul.f32 %v1909_v39, %v157_v36 }
 0x14e   : > { %1689 = vmatprep.mubr.f32.mxu1 %v2251_v52  ;;  %1770 = vmatprep.mubr.f32.mxu0 %v2263_v4 }
 0x14f   : > { %v161_v50 = vsel %vm160_vm1, %v157_v36, %v159_v43 }
 0x150   : > { %v164_v53 = vsel %vm162_vm2, %v163_v46, %v161_v50 }
 0x151   : > { %1690 = vmatmul.mubr.f32.gmra.mrb[12].mxu1 %v2259_v62  ;;  %1771 = vmatmul.mubr.f32.gmra.mrb[14].mxu0 %v2271_v16  ;;  %v165_v11 = vsub.f32 1.0, %v164_v53 }
 0x152   : > { %1692 = vmatprep.mubr.f32.mxu1 %v2267_v8 }
 0x153   : > { %v166_v0 = vmax.f32 %v165_v11, 0.0 }
 0x155   : > { %1693 = vmatmul.mubr.f32.gmra.mrb[14].mxu1 %v2275_v24  ;;  %v170_v3 = vsel %vm169_vm4, %v166_v0, 0.0 }
 0x156   : > { %v172_v7 = vsel %vm171_vm3, %v170_v3, 0.0 }
 0x157   : > { %173 = vadd.xlane.f32.xlu0 %v172_v7 }
 0x208   : > { %v1751_v10 = vpop.f32.mrb[0].mxu0 }
 0x209   : > { %v1263_v17 = vpop.f32.mrb[1].mxu0 }
 0x20c   : > { %v1673_v22 = vpop.f32.mrb[0].mxu1  ;;  %v1754_v28 = vpop.f32.mrb[2].mxu0 }
 0x20d   : > { %v1773_v33 = vadd.f32 %v1751_v10, %v1673_v22  ;;  %v728_v35 = vpop.f32.mrb[1].mxu1  ;;  %v1275_v37 = vpop.f32.mrb[3].mxu0 }
 0x20e   : > { %v1774_v38 = vadd.f32 %v1263_v17, %v728_v35 }
 0x20f   : > { %v1358_v40 = vmul.f32 %v1773_v33, %v1773_v33 }
 0x210   : > { %v1357_v41 = vmul.f32 %v1774_v38, %v1774_v38  ;;  %v1676_v42 = vpop.f32.mrb[2].mxu1  ;;  %v1757_v44 = vpop.f32.mrb[4].mxu0 }
 0x211   : > { %v1775_v45 = vadd.f32 %v1754_v28, %v1676_v42  ;;  %v742_v47 = vpop.f32.mrb[3].mxu1  ;;  %v1287_v48 = vpop.f32.mrb[5].mxu0 }
 0x212   : > { %v1373_v49 = vadd.f32 %v1358_v40, %v1357_v41  ;;  %v1776_v51 = vadd.f32 %v1275_v37, %v742_v47 }
 0x213   : > { %v1360_v61 = vmul.f32 %v1775_v45, %v1775_v45 }
 0x214   : > { %v1359_v52 = vmul.f32 %v1776_v51, %v1776_v51  ;;  %v1679_v54 = vpop.f32.mrb[4].mxu1  ;;  %v1760_v55 = vpop.f32.mrb[6].mxu0  ;;  %v1397_v51 = vmul.f32 %v2348_v29, %v2348_v29 }
 0x215   : > { %v1777_v56 = vadd.f32 %v1757_v44, %v1679_v54  ;;  %v756_v58 = vpop.f32.mrb[5].mxu1  ;;  %v1299_v59 = vpop.f32.mrb[7].mxu0 }
 0x216   : > { %v1374_v62 = vadd.f32 %v1373_v49, %v1359_v52  ;;  %v1778_v63 = vadd.f32 %v1287_v48, %v756_v58  ;;  %v1398_v54 = vsel %vm171_vm3, %v1397_v51, 0.0 }
 0x217   : > { %v1362_v14 = vmul.f32 %v1777_v56, %v1777_v56 }
 0x218   : > { %v1361_v1 = vmul.f32 %v1778_v63, %v1778_v63  ;;  %v1375_v2 = vadd.f32 %v1374_v62, %v1360_v61  ;;  %v1682_v4 = vpop.f32.mrb[6].mxu1  ;;  %v1763_v5 = vpop.f32.mrb[8].mxu0 }
 0x219   : > { %v1779_v6 = vadd.f32 %v1760_v55, %v1682_v4  ;;  %v770_v8 = vpop.f32.mrb[7].mxu1  ;;  %v1311_v9 = vpop.f32.mrb[9].mxu0 }
 0x21a   : > { %v1376_v15 = vadd.f32 %v1375_v2, %v1361_v1  ;;  %v1780_v16 = vadd.f32 %v1299_v59, %v770_v8  ;;  %v174_v55 = vpop.xlane.xlu0 %173 }
 0x21b   : > { %v1364_v34 = vmul.f32 %v1779_v6, %v1779_v6  ;;  %v175_v56 = vrot.slane %v174_v55, 4 }
 0x21c   : > { %v1363_v18 = vmul.f32 %v1780_v16, %v1780_v16  ;;  %v1377_v21 = vadd.f32 %v1376_v15, %v1362_v14  ;;  %v1685_v24 = vpop.f32.mrb[8].mxu1  ;;  %v1766_v26 = vpop.f32.mrb[10].mxu0 }
 0x21d   : > { %v1781_v27 = vadd.f32 %v1763_v5, %v1685_v24  ;;  %v784_v30 = vpop.f32.mrb[9].mxu1  ;;  %v1323_v31 = vpop.f32.mrb[11].mxu0  ;;  %v176_v58 = vadd.f32 %v175_v56, %v174_v55 }
 0x21e   : > { %v1378_v12 = vadd.f32 %v1377_v21, %v1363_v18  ;;  %v1782_v13 = vadd.f32 %v1311_v9, %v784_v30 }
 0x21f   : > { %v1366_v43 = vmul.f32 %v1781_v27, %v1781_v27  ;;  %v177_v59 = vrot.slane %v176_v58, 2 }
 0x220   : > { %v1365_v19 = vmul.f32 %v1782_v13, %v1782_v13  ;;  %v1379_v20 = vadd.f32 %v1378_v12, %v1364_v34  ;;  %v1688_v23 = vpop.f32.mrb[10].mxu1  ;;  %v1769_v25 = vpop.f32.mrb[12].mxu0 }
 0x221   : > { %v1783_v32 = vadd.f32 %v1766_v26, %v1688_v23  ;;  %v798_v36 = vpop.f32.mrb[11].mxu1  ;;  %v1335_v39 = vpop.f32.mrb[13].mxu0  ;;  %v178_v61 = vadd.f32 %v177_v59, %v176_v58 }
 0x222   : > { %v1380_v46 = vadd.f32 %v1379_v20, %v1365_v19  ;;  %v1784_v50 = vadd.f32 %v1323_v31, %v798_v36 }
 0x223   : > { %v1368_v17 = vmul.f32 %v1783_v32, %v1783_v32  ;;  %v179_v62 = vrot.slane %v178_v61, 1 }
 0x224   : > { %v1367_v53 = vmul.f32 %v1784_v50, %v1784_v50  ;;  %v1381_v57 = vadd.f32 %v1380_v46, %v1366_v43  ;;  %v1691_v11 = vpop.f32.mrb[12].mxu1  ;;  %v1772_v0 = vpop.f32.mrb[14].mxu0 }
 0x225   : > { %v1785_v3 = vadd.f32 %v1769_v25, %v1691_v11  ;;  %v812_v7 = vpop.f32.mrb[13].mxu1  ;;  %v1347_v10 = vpop.f32.mrb[15].mxu0  ;;  %v180_v63 = vadd.f32 %v179_v62, %v178_v61 }
 0x226   : > { %v1382_v22 = vadd.f32 %v1381_v57, %v1367_v53  ;;  %v1786_v28 = vadd.f32 %v1335_v39, %v812_v7 }
 0x227   : > { %v1370_v41 = vmul.f32 %v1785_v3, %v1785_v3  ;;  %1853 = vpush %v180_v63 }
 0x228   : > { %v1369_v33 = vmul.f32 %v1786_v28, %v1786_v28  ;;  %v1383_v35 = vadd.f32 %v1382_v22, %v1368_v17  ;;  %v1694_v37 = vpop.f32.mrb[14].mxu1 }
 0x229   : > { %v1787_v38 = vadd.f32 %v1772_v0, %v1694_v37  ;;  %v826_v40 = vpop.f32.mrb[15].mxu1 }
 0x22a   : > { %v1384_v42 = vadd.f32 %v1383_v35, %v1369_v33  ;;  %v1788_v44 = vadd.f32 %v1347_v10, %v826_v40 }
 0x22b   : > { %v1372_v48 = vmul.f32 %v1787_v38, %v1787_v38 }
 0x22c   : > { %v1371_v45 = vmul.f32 %v1788_v44, %v1788_v44  ;;  %v1385_v47 = vadd.f32 %v1384_v42, %v1370_v41 }
 0x22e   : > { %v1386_v49 = vadd.f32 %v1385_v47, %v1371_v45 }
 0x230   : > { %v1387_v52 = vadd.f32 %v1386_v49, %v1372_v48 }
 0x232   : > { %1388 = vadd.xlane.f32.xlu1 %v1387_v52 }
 0x236   : > { %1399 = vadd.xlane.f32.xlu1 %v1398_v54 }
 0x258   : > { %s1854_s25 = spop %1853 }
 0x259   : > { %s184_s27 = smul.f32 0.03125, %s1854_s25 }
 0x25b   : > { %v1413_v27 = vstv %s184_s27 }
 0x2bf   : > { %v1389_v1 = vpop.xlane.xlu1 %1388 }
 0x2c0   : > { %v1390_v2 = vrot.slane %v1389_v1, 4 }
 0x2c2   : > { %v1391_v4 = vadd.f32 %v1390_v2, %v1389_v1 }
 0x2c3   : > { %v1400_v5 = vpop.xlane.xlu1 %1399 }
 0x2c4   : > { %v1392_v6 = vrot.slane %v1391_v4, 2  ;;  %v1401_v29 = vrot.slane %v1400_v5, 4 }
 0x2c6   : > { %v1402_v8 = vadd.f32 %v1401_v29, %v1400_v5  ;;  %v1393_v9 = vadd.f32 %v1392_v6, %v1391_v4 }
 0x2c8   : > { %v1403_v14 = vrot.slane %v1402_v8, 2  ;;  %v1394_v15 = vrot.slane %v1393_v9, 1 }
 0x2ca   : > { %v1404_v16 = vadd.f32 %v1403_v14, %v1402_v8  ;;  %v1395_v18 = vadd.f32 %v1394_v15, %v1393_v9 }
 0x2cc   : > { %1855 = vpush %v1395_v18  ;;  %v1405_v21 = vrot.slane %v1404_v16, 1 }
 0x2ce   : > { %v1406_v24 = vadd.f32 %v1405_v21, %v1404_v16 }
 0x2d0   : > { %1857 = vpush %v1406_v24 }
 0x2fd   : > { %s1856_s28 = spop %1855 }
 0x301   : > { %s1858_s29 = spop %1857 }
 0x302   : > { %s1408_s3 = ssub.f32 %s1856_s28, %s1858_s29 }
 0x304   : > { %v1411_v26 = vstv %s1408_s3 }
 0x305   : > { %v1412_v30 = vsel %vm1410_vm5, %v1411_v26, 0.0 }
 0x306   : > { %v1414_v31 = vsel %vm1409_vm6, %v1413_v27, %v1412_v30 }
 0x307   : > { %1415 = vst [vmem:[%s134_s4] sm:$0xff] %v1414_v31 }
 0x308   : > { %1953 = shalt.err (!%p1950_p2)
}
 0x309   : > { %s1954_s23 = scalar_lea.hbm %s2365_s14, 128  ;;  %s1958_s30 = scalar_lea.hbm %s2410_s1, 256 }
 0x30a   : > { %p1955_p4 = scmp.ne.s32.totalorder %s2365_s14, %s1954_s23  ;;  %p1959_p9 = scmp.lt.u32.totalorder %s2365_s14, %s2410_s1 }
 0x30b   : > { %p1960_p1 = scmp.lt.u32.totalorder %s1958_s30, %s1954_s23  ;;  %p1962_p6 = scmp.lt.u32.totalorder %s1954_s23, %s2365_s14 }
 0x30c   : > { %p1956_p5 = pnand %p1955_p4, %p2417_p11 }
 0x30d   : > { %p1961_p3 = por %p1960_p1, %p1959_p9 }
 0x30e   : > { %p1957_p7 = pneg %p1956_p5 }
 0x30f   : > { %p1963_p12 = por %p1962_p6, %p1961_p3 }
 0x311   : > { %p1964_p13 = pnand %p1963_p12, %p1957_p7 }
 0x313   : > { %1967 = shalt.err (!%p1964_p13)
}
 0x314   : > { %1861 = dma.vmem_to_hbm [thread:$0]  (%p2417_p11), %s2367_s5, 128, %s2365_s14, %s1417_s10  }
 0x315 PF: > { %s1442_s27 = sand.u32 1, %s1994_s6   ;;  %p2418_p8 = scmp.ne.s32.totalorder %s2415_s19, 0 }
 0x316   : > { %p2419_p10 = scmp.ge.s32.totalorder %s2006_s9, 2  ;;  %s1443_s28 = scalar_lea.sflag [#allocation4], %s1442_s27 }
 0x318   : > { %p1868_p0 = pnand %p2419_p10, %p2418_p8 }
 0x31a   : > { %1989 = dma.done.wait (!%p1868_p0), %s1443_s28, 128  }
 0x31b   : > { %1991 = vsyncadd (!%p1868_p0), %s1443_s28, 4294967168  ;;  %p14_p2 = scmp.ge.s32.totalorder %s2047_s12, 4   ;;  %s2420_s6 = smov %s1998_s7 }
 0x31c   : > { %s2421_s7 = smov %s2002_s8  ;;  %s2422_s8 = smov %s2059_s15 }
 0x31d   : > { %s2423_s9 = smov %s2047_s12  ;;  %16 = sbr.rel (!%p14_p2) target bundleno = 5 (0x5), region = 70 }
 0x324   :  { %1448 = vsyncpa [#allocation3], 1 }
 0x325   :  { %1450 = vsyncpa [#allocation3 + $0x1], 1 }
 0x326   :  { %1451 = vsyncpa [#allocation4], 1 }
 0x327   :  { %1453 = vsyncpa [#allocation4 + $0x1], 1 }

</bundles_post_ra>
